<compile_context>
chip_gen: v6e
topology: v6e:2x2x1
jax: 0.10.0
libtpu: 0.0.40
codegen_flags: <defaults>
</compile_context>

<pallas_src>
import jax
import jax.numpy as jnp
from jax import lax
from jax.experimental import pallas as pl
from jax.experimental.pallas import tpu as pltpu

EPS = 1e-5  # nn.LayerNorm default eps


# ------------------------- per-(batch, layer) Pallas kernel ------------------

def transformer_layer_kernel(x_ref, wq_ref, wk_ref, wv_ref, wu_ref,
                             ln1g_ref, ln1b_ref,
                             w1_ref, b1_ref, w2_ref, b2_ref,
                             ln2g_ref, ln2b_ref,
                             wp_ref, bp_ref,
                             o_ref, x_sc):
    """Grid = (B, depth). One grid step = one TransformerBlock for one batch element.

    x_ref:   (1, T, E)  f32 embedding block for this batch element
    wq/wk/wv/wu: (1, E, E)  bf16 per-layer weights
    ln*:     (1, 1, E)  f32
    w1/b1:   (1, E, H*E) bf16 / (1, 1, H*E) f32
    w2/b2:   (1, H*E, E) bf16 / (1, 1, E)   f32
    wp/bp:   (E, Vp) bf16 / (1, Vp) f32   (shared across all grid steps)
    o_ref:   (1, T, Vp) f32
    x_sc:    (T, E) f32 VMEM scratch -- activation carried across the depth axis
    """
    d = pl.program_id(1)

    @pl.when(d == 0)
    def _():
        x_sc[...] = x_ref[0]                               # seed activation from embedding

    x = x_sc[...]                                          # (T, E) f32
    xb = x.astype(jnp.bfloat16)

    # ----- SelfAttention (heads=1, no bias) -----
    q = jnp.dot(xb, wq_ref[0], preferred_element_type=jnp.float32)   # (T, E)
    k = jnp.dot(xb, wk_ref[0], preferred_element_type=jnp.float32)
    v = jnp.dot(xb, wv_ref[0], preferred_element_type=jnp.float32)

    # dot = keys @ queries^T  (matches torch.bmm(keys, queries.transpose(1,2)));
    # contract on E directly, no 1/sqrt(k) scaling.
    dot = jnp.einsum('id,jd->ij',
                     k.astype(jnp.bfloat16), q.astype(jnp.bfloat16),
                     preferred_element_type=jnp.float32)   # (T, T)

    # mask_fn: -inf only where strict upper triangle AND dot == 0.0
    T = dot.shape[0]
    row = lax.broadcasted_iota(jnp.int32, (T, T), 0)
    col = lax.broadcasted_iota(jnp.int32, (T, T), 1)
    dot = jnp.where(jnp.logical_and(col > row, dot == 0.0), -jnp.inf, dot)

    # softmax over last dim (exact division; diagonal never masked -> rows stay finite)
    m = jnp.max(dot, axis=-1, keepdims=True)
    e = jnp.exp(dot - m)
    p = e / jnp.sum(e, axis=-1, keepdims=True)

    att = jnp.dot(p.astype(jnp.bfloat16), v.astype(jnp.bfloat16),
                  preferred_element_type=jnp.float32)      # (T, E)
    att = jnp.dot(att.astype(jnp.bfloat16), wu_ref[0],
                  preferred_element_type=jnp.float32)      # unifyheads

    # ----- residual + LayerNorm1 (single pass: var = E[y^2] - mu^2) -----
    y = x + att
    mu = jnp.mean(y, axis=-1, keepdims=True)
    ms = jnp.mean(y * y, axis=-1, keepdims=True)
    y = (y - mu) * lax.rsqrt(ms - mu * mu + EPS) * ln1g_ref[0] + ln1b_ref[0]

    # ----- feedforward: Linear -> ReLU -> Linear (with biases) -----
    h = jnp.dot(y.astype(jnp.bfloat16), w1_ref[0],
                preferred_element_type=jnp.float32) + b1_ref[0]
    h = jnp.maximum(h, 0.0)
    ff = jnp.dot(h.astype(jnp.bfloat16), w2_ref[0],
                 preferred_element_type=jnp.float32) + b2_ref[0]

    # ----- residual + LayerNorm2 (dropout = identity in eval) -----
    z = y + ff
    mu2 = jnp.mean(z, axis=-1, keepdims=True)
    ms2 = jnp.mean(z * z, axis=-1, keepdims=True)
    x_new = (z - mu2) * lax.rsqrt(ms2 - mu2 * mu2 + EPS) * ln2g_ref[0] + ln2b_ref[0]
    x_sc[...] = x_new

    # ----- final to_prob projection only on the last layer, lane-dense output -----
    @pl.when(d == pl.num_programs(1) - 1)
    def _():
        o_ref[0] = (jnp.dot(x_new.astype(jnp.bfloat16), wp_ref[...],
                            preferred_element_type=jnp.float32) + bp_ref[...])


# ------------------------- wrapper -------------------------------------------

def transformer_forward(tokens, params):
    """tokens: (B, T) int32 -> logits (B, T, vocab_size+1)."""
    B, T = tokens.shape
    E = params["token_table"].shape[1]
    depth = params["wq"].shape[0]
    HE = params["w1"].shape[2]
    Vp = params["wp_pad"].shape[1]
    V1 = params["V1"]

    # Embedding gathers are glue (plain JAX); pos_embed indexed by TOKEN ids,
    # exactly like the reference code.
    emb = params["token_table"][tokens] + params["pos_table"][tokens]      # (B, T, E)
    x = emb.astype(jnp.float32)

    def per_batch_spec(shape):
        n = len(shape) - 1
        return pl.BlockSpec((1,) + shape[1:], lambda b, d, _n=n: (b,) + (0,) * _n)

    def per_layer_spec(shape):
        n = len(shape) - 1
        return pl.BlockSpec((1,) + shape[1:], lambda b, d, _n=n: (d,) + (0,) * _n)

    def shared_spec(shape):
        n = len(shape)
        return pl.BlockSpec(shape, lambda b, d, _n=n: (0,) * _n)

    layer_weights = [params["wq"], params["wk"], params["wv"], params["wu"],
                     params["ln1_g"], params["ln1_b"],
                     params["w1"], params["b1"], params["w2"], params["b2"],
                     params["ln2_g"], params["ln2_b"]]

    in_specs = ([per_batch_spec(x.shape)]
                + [per_layer_spec(w.shape) for w in layer_weights]
                + [shared_spec(params["wp_pad"].shape),
                   shared_spec(params["bp_pad"].shape)])

    # Advisory cost estimate for XLA scheduling of surrounding ops.
    flops_layer = 8 * T * E * E + 4 * T * T * E + 4 * T * E * HE
    flops = B * depth * flops_layer + B * 2 * T * E * Vp
    weight_bytes = sum(int(w.size) * w.dtype.itemsize for w in layer_weights)
    bytes_accessed = (B * weight_bytes
                      + int(params["wp_pad"].size) * 2 + int(params["bp_pad"].size) * 4
                      + int(x.size) * 4 + B * T * Vp * 4)
    cost = pl.CostEstimate(flops=int(flops),
                           transcendentals=int(B * depth * T * T),
                           bytes_accessed=int(bytes_accessed))

    out = pl.pallas_call(
        transformer_layer_kernel,
        out_shape=jax.ShapeDtypeStruct((B, T, Vp), jnp.float32),
        grid_spec=pltpu.PrefetchScalarGridSpec(
            num_scalar_prefetch=0,
            grid=(B, depth),                                  # B parallel, depth carried
            in_specs=in_specs,
            out_specs=pl.BlockSpec((1, T, Vp), lambda b, d: (b, 0, 0)),
            scratch_shapes=[pltpu.VMEM((T, E), jnp.float32)]),
        compiler_params=pltpu.CompilerParams(
            dimension_semantics=("parallel", "arbitrary"),
            vmem_limit_bytes=32 * 1024 * 1024),
        cost_estimate=cost,
    )(x, *layer_weights, params["wp_pad"], params["bp_pad"])

    return out[:, :, :V1]


# ------------------------- parameter construction ---------------------------

def init_params(key, vocab_size, hidden, embed_dim, heads, depth, seq_length):
    assert heads == 1, "kernel is specialized to the SelfAttention default heads=1"
    E, H = embed_dim, hidden
    V1 = vocab_size + 1
    Vp = ((V1 + 127) // 128) * 128
    keys = jax.random.split(key, 4 + depth)

    def rnd(k, shape, scale=0.1):
        return (scale * jax.random.normal(k, shape)).astype(jnp.float32)

    # Embedding tables (padding_idx=0 -> row 0 zeroed)
    token_table = jax.random.normal(keys[0], (V1, E)).astype(jnp.float32).at[0].set(0.0)
    pos_table = jax.random.normal(keys[1], (seq_length, E)).astype(jnp.float32).at[0].set(0.0)

    wq, wk, wv, wu, w1, b1, w2, b2 = ([] for _ in range(8))
    for d in range(depth):
        bk = jax.random.split(keys[4 + d], 8)
        wq.append(rnd(bk[0], (E, E)))
        wk.append(rnd(bk[1], (E, E)))
        wv.append(rnd(bk[2], (E, E)))
        wu.append(rnd(bk[3], (E, E)))
        w1.append(rnd(bk[4], (E, H * E)))
        b1.append(rnd(bk[5], (1, H * E)))
        w2.append(rnd(bk[6], (H * E, E)))
        b2.append(rnd(bk[7], (1, E)))

    wp = rnd(keys[2], (E, V1))
    bp = rnd(keys[3], (1, V1))
    # zero-pad the projection to 128 lanes (lane-dense output store)
    wp_pad = jnp.zeros((E, Vp), jnp.float32).at[:, :V1].set(wp).astype(jnp.bfloat16)
    bp_pad = jnp.zeros((1, Vp), jnp.float32).at[:, :V1].set(bp)

    def stack_bf16(lst):
        return jnp.stack(lst).astype(jnp.bfloat16)

    return dict(
        token_table=token_table, pos_table=pos_table,
        wq=stack_bf16(wq), wk=stack_bf16(wk), wv=stack_bf16(wv), wu=stack_bf16(wu),
        ln1_g=jnp.ones((depth, 1, E), jnp.float32),
        ln1_b=jnp.zeros((depth, 1, E), jnp.float32),
        w1=stack_bf16(w1), b1=jnp.stack(b1),
        w2=stack_bf16(w2), b2=jnp.stack(b2),
        ln2_g=jnp.ones((depth, 1, E), jnp.float32),
        ln2_b=jnp.zeros((depth, 1, E), jnp.float32),
        wp_pad=wp_pad, bp_pad=bp_pad, V1=V1)


# ------------------------- main ----------------------------------------------

if __name__ == "__main__":
    vocab_size, hidden, embed_dim, heads, depth, seq_length = 10, 4, 32, 1, 2, 8
    B, T = 2, seq_length

    key = jax.random.PRNGKey(0)
    pkey, tkey = jax.random.split(key)
    params = init_params(pkey, vocab_size, hidden, embed_dim, heads, depth, seq_length)

    # tokens in [1, seq_length-1] so both embedding tables can be indexed by them
    # (pos_embed is indexed by token ids in the reference module).
    tokens = jax.random.randint(tkey, (B, T), 1, seq_length, dtype=jnp.int32)

    logits = transformer_forward(tokens, params)
    jax.block_until_ready(logits)
    assert logits.shape == (B, T, vocab_size + 1)
    assert bool(jnp.all(jnp.isfinite(logits)))
    print("KERNEL_OK")
</pallas_src>

<mosaic_0001>
module attributes {stable_mosaic.version = 11 : i64} {
  func.func @transformer_layer_kernel(%arg0: i32, %arg1: i32, %arg2: memref<1x8x32xf32, #tpu.memory_space<vmem>>, %arg3: memref<1x32x32xbf16, #tpu.memory_space<vmem>>, %arg4: memref<1x32x32xbf16, #tpu.memory_space<vmem>>, %arg5: memref<1x32x32xbf16, #tpu.memory_space<vmem>>, %arg6: memref<1x32x32xbf16, #tpu.memory_space<vmem>>, %arg7: memref<1x1x32xf32, #tpu.memory_space<vmem>>, %arg8: memref<1x1x32xf32, #tpu.memory_space<vmem>>, %arg9: memref<1x32x128xbf16, #tpu.memory_space<vmem>>, %arg10: memref<1x1x128xf32, #tpu.memory_space<vmem>>, %arg11: memref<1x128x32xbf16, #tpu.memory_space<vmem>>, %arg12: memref<1x1x32xf32, #tpu.memory_space<vmem>>, %arg13: memref<1x1x32xf32, #tpu.memory_space<vmem>>, %arg14: memref<1x1x32xf32, #tpu.memory_space<vmem>>, %arg15: memref<32x128xbf16, #tpu.memory_space<vmem>>, %arg16: memref<1x128xf32, #tpu.memory_space<vmem>>, %arg17: memref<1x8x128xf32, #tpu.memory_space<vmem>>, %arg18: memref<8x32xf32, #tpu.memory_space<vmem>>) attributes {dimension_semantics = [#tpu.dimension_semantics<parallel>, #tpu.dimension_semantics<arbitrary>], iteration_bounds = array<i64: 2, 2>, scalar_prefetch = 0 : i64, scratch_operands = 1 : i64, tpu.core_type = #tpu.core_type<tc>, window_params = [{transform_indices = @transform_0, window_bounds = array<i64: 1, 8, 32>}, {transform_indices = @transform_1, window_bounds = array<i64: 1, 32, 32>}, {transform_indices = @transform_2, window_bounds = array<i64: 1, 32, 32>}, {transform_indices = @transform_3, window_bounds = array<i64: 1, 32, 32>}, {transform_indices = @transform_4, window_bounds = array<i64: 1, 32, 32>}, {transform_indices = @transform_5, window_bounds = array<i64: 1, 1, 32>}, {transform_indices = @transform_6, window_bounds = array<i64: 1, 1, 32>}, {transform_indices = @transform_7, window_bounds = array<i64: 1, 32, 128>}, {transform_indices = @transform_8, window_bounds = array<i64: 1, 1, 128>}, {transform_indices = @transform_9, window_bounds = array<i64: 1, 128, 32>}, {transform_indices = @transform_10, window_bounds = array<i64: 1, 1, 32>}, {transform_indices = @transform_11, window_bounds = array<i64: 1, 1, 32>}, {transform_indices = @transform_12, window_bounds = array<i64: 1, 1, 32>}, {pipeline_mode = #tpu.pipeline_mode<synchronous>, transform_indices = @transform_13, window_bounds = array<i64: 32, 128>}, {pipeline_mode = #tpu.pipeline_mode<synchronous>, transform_indices = @transform_14, window_bounds = array<i64: 1, 128>}, {transform_indices = @transform_15, window_bounds = array<i64: 1, 8, 128>}]} {
    %c0_i32 = arith.constant 0 : i32
    %0 = arith.cmpi eq, %arg1, %c0_i32 : i32
    %1 = arith.extui %0 : i1 to i32
    %c0_i32_0 = arith.constant 0 : i32
    %2 = arith.cmpi ne, %1, %c0_i32_0 : i32
    scf.if %2 {
      %c0_63 = arith.constant 0 : index
      %c0_64 = arith.constant 0 : index
      %c0_65 = arith.constant 0 : index
      %117 = vector.load %arg2[%c0_63, %c0_64, %c0_65] : memref<1x8x32xf32, #tpu.memory_space<vmem>>, vector<1x8x32xf32>
      %118 = vector.shape_cast %117 : vector<1x8x32xf32> to vector<8x32xf32>
      %c0_66 = arith.constant 0 : index
      %c0_67 = arith.constant 0 : index
      %119 = vector.load %arg18[%c0_66, %c0_67] : memref<8x32xf32, #tpu.memory_space<vmem>>, vector<8x32xf32>
      tpu.vector_store %arg18[%c0_66, %c0_67], %118 {strides = array<i32>} : memref<8x32xf32, #tpu.memory_space<vmem>>, vector<8x32xf32>,
    } else {
    }
    %c0 = arith.constant 0 : index
    %c0_1 = arith.constant 0 : index
    %3 = vector.load %arg18[%c0, %c0_1] : memref<8x32xf32, #tpu.memory_space<vmem>>, vector<8x32xf32>
    %4 = arith.truncf %3 : vector<8x32xf32> to vector<8x32xbf16>
    %c0_2 = arith.constant 0 : index
    %c0_3 = arith.constant 0 : index
    %c0_4 = arith.constant 0 : index
    %5 = vector.load %arg3[%c0_2, %c0_3, %c0_4] : memref<1x32x32xbf16, #tpu.memory_space<vmem>>, vector<1x32x32xbf16>
    %6 = vector.shape_cast %5 : vector<1x32x32xbf16> to vector<32x32xbf16>
    %cst = arith.constant dense<0.000000e+00> : vector<8x32xf32>
    %7 = tpu.matmul %4, %6, %cst {dimension_numbers = #tpu.dot_dimension_numbers<[1], [0], [0], [1], [0, 0, 1, 1], [], []>} : vector<8x32xbf16>, vector<32x32xbf16>, vector<8x32xf32> -> vector<8x32xf32>
    %c0_5 = arith.constant 0 : index
    %c0_6 = arith.constant 0 : index
    %c0_7 = arith.constant 0 : index
    %8 = vector.load %arg4[%c0_5, %c0_6, %c0_7] : memref<1x32x32xbf16, #tpu.memory_space<vmem>>, vector<1x32x32xbf16>
    %9 = vector.shape_cast %8 : vector<1x32x32xbf16> to vector<32x32xbf16>
    %cst_8 = arith.constant dense<0.000000e+00> : vector<8x32xf32>
    %10 = tpu.matmul %4, %9, %cst_8 {dimension_numbers = #tpu.dot_dimension_numbers<[1], [0], [0], [1], [0, 0, 1, 1], [], []>} : vector<8x32xbf16>, vector<32x32xbf16>, vector<8x32xf32> -> vector<8x32xf32>
    %c0_9 = arith.constant 0 : index
    %c0_10 = arith.constant 0 : index
    %c0_11 = arith.constant 0 : index
    %11 = vector.load %arg5[%c0_9, %c0_10, %c0_11] : memref<1x32x32xbf16, #tpu.memory_space<vmem>>, vector<1x32x32xbf16>
    %12 = vector.shape_cast %11 : vector<1x32x32xbf16> to vector<32x32xbf16>
    %cst_12 = arith.constant dense<0.000000e+00> : vector<8x32xf32>
    %13 = tpu.matmul %4, %12, %cst_12 {dimension_numbers = #tpu.dot_dimension_numbers<[1], [0], [0], [1], [0, 0, 1, 1], [], []>} : vector<8x32xbf16>, vector<32x32xbf16>, vector<8x32xf32> -> vector<8x32xf32>
    %14 = arith.truncf %10 : vector<8x32xf32> to vector<8x32xbf16>
    %15 = arith.truncf %7 : vector<8x32xf32> to vector<8x32xbf16>
    "tpu.trace_start"() <{level = 10 : i32, message = "id,jd->ij"}> : () -> ()
    %cst_13 = arith.constant dense<0.000000e+00> : vector<8x8xf32>
    %16 = tpu.matmul %14, %15, %cst_13 {dimension_numbers = #tpu.dot_dimension_numbers<[1], [1], [0], [0], [0, 0, 1, 0], [], []>} : vector<8x32xbf16>, vector<8x32xbf16>, vector<8x8xf32> -> vector<8x8xf32>
    "tpu.trace_stop"() : () -> ()
    %17 = tpu.iota {dimensions = array<i32: 0>} : vector<8x8xi32>
    %18 = tpu.iota {dimensions = array<i32: 1>} : vector<8x8xi32>
    %19 = arith.cmpi sgt, %18, %17 : vector<8x8xi32>
    %cst_14 = arith.constant 0.000000e+00 : f32
    %20 = vector.broadcast %cst_14 : f32 to vector<8x8xf32>
    %21 = arith.cmpf oeq, %16, %20 : vector<8x8xf32>
    %22 = arith.andi %19, %21 : vector<8x8xi1>
    %cst_15 = arith.constant 0xFF800000 : f32
    %23 = vector.broadcast %cst_15 : f32 to vector<8x8xf32>
    %24 = arith.select %22, %23, %16 : vector<8x8xi1>, vector<8x8xf32>
    %cst_16 = arith.constant dense<0xFF800000> : vector<8xf32>
    %25 = vector.multi_reduction <maximumf>, %24, %cst_16 [1] : vector<8x8xf32> to vector<8xf32>
    %26 = vector.shape_cast %25 : vector<8xf32> to vector<8x1xf32>
    %27 = vector.broadcast %26 : vector<8x1xf32> to vector<8x8xf32>
    %28 = arith.subf %24, %27 : vector<8x8xf32>
    %29 = math.exp %28 : vector<8x8xf32>
    %cst_17 = arith.constant dense<0.000000e+00> : vector<8xf32>
    %30 = vector.multi_reduction <add>, %29, %cst_17 [1] : vector<8x8xf32> to vector<8xf32>
    %31 = vector.shape_cast %30 : vector<8xf32> to vector<8x1xf32>
    %32 = vector.broadcast %31 : vector<8x1xf32> to vector<8x8xf32>
    %33 = arith.divf %29, %32 : vector<8x8xf32>
    %34 = arith.truncf %33 : vector<8x8xf32> to vector<8x8xbf16>
    %35 = arith.truncf %13 : vector<8x32xf32> to vector<8x32xbf16>
    %cst_18 = arith.constant dense<0.000000e+00> : vector<8x32xf32>
    %36 = tpu.matmul %34, %35, %cst_18 {dimension_numbers = #tpu.dot_dimension_numbers<[1], [0], [0], [1], [0, 0, 1, 1], [], []>} : vector<8x8xbf16>, vector<8x32xbf16>, vector<8x32xf32> -> vector<8x32xf32>
    %37 = arith.truncf %36 : vector<8x32xf32> to vector<8x32xbf16>
    %c0_19 = arith.constant 0 : index
    %c0_20 = arith.constant 0 : index
    %c0_21 = arith.constant 0 : index
    %38 = vector.load %arg6[%c0_19, %c0_20, %c0_21] : memref<1x32x32xbf16, #tpu.memory_space<vmem>>, vector<1x32x32xbf16>
    %39 = vector.shape_cast %38 : vector<1x32x32xbf16> to vector<32x32xbf16>
    %cst_22 = arith.constant dense<0.000000e+00> : vector<8x32xf32>
    %40 = tpu.matmul %37, %39, %cst_22 {dimension_numbers = #tpu.dot_dimension_numbers<[1], [0], [0], [1], [0, 0, 1, 1], [], []>} : vector<8x32xbf16>, vector<32x32xbf16>, vector<8x32xf32> -> vector<8x32xf32>
    %41 = arith.addf %3, %40 : vector<8x32xf32>
    %cst_23 = arith.constant dense<0.000000e+00> : vector<8xf32>
    %42 = vector.multi_reduction <add>, %41, %cst_23 [1] : vector<8x32xf32> to vector<8xf32>
    %43 = vector.shape_cast %42 : vector<8xf32> to vector<8x1xf32>
    %cst_24 = arith.constant 3.200000e+01 : f32
    %44 = vector.broadcast %cst_24 : f32 to vector<8x1xf32>
    %45 = arith.divf %43, %44 : vector<8x1xf32>
    %46 = arith.mulf %41, %41 : vector<8x32xf32>
    %cst_25 = arith.constant dense<0.000000e+00> : vector<8xf32>
    %47 = vector.multi_reduction <add>, %46, %cst_25 [1] : vector<8x32xf32> to vector<8xf32>
    %48 = vector.shape_cast %47 : vector<8xf32> to vector<8x1xf32>
    %cst_26 = arith.constant 3.200000e+01 : f32
    %49 = vector.broadcast %cst_26 : f32 to vector<8x1xf32>
    %50 = arith.divf %48, %49 : vector<8x1xf32>
    %51 = vector.broadcast %45 : vector<8x1xf32> to vector<8x32xf32>
    %52 = arith.subf %41, %51 : vector<8x32xf32>
    %53 = arith.mulf %45, %45 : vector<8x1xf32>
    %54 = arith.subf %50, %53 : vector<8x1xf32>
    %cst_27 = arith.constant 9.99999974E-6 : f32
    %55 = vector.broadcast %cst_27 : f32 to vector<8x1xf32>
    %56 = arith.addf %54, %55 : vector<8x1xf32>
    %57 = math.rsqrt %56 : vector<8x1xf32>
    %58 = vector.broadcast %57 : vector<8x1xf32> to vector<8x32xf32>
    %59 = arith.mulf %52, %58 : vector<8x32xf32>
    %c0_28 = arith.constant 0 : index
    %c0_29 = arith.constant 0 : index
    %c0_30 = arith.constant 0 : index
    %60 = vector.load %arg7[%c0_28, %c0_29, %c0_30] : memref<1x1x32xf32, #tpu.memory_space<vmem>>, vector<1x1x32xf32>
    %61 = vector.shape_cast %60 : vector<1x1x32xf32> to vector<1x32xf32>
    %62 = vector.broadcast %61 : vector<1x32xf32> to vector<8x32xf32>
    %63 = arith.mulf %59, %62 : vector<8x32xf32>
    %c0_31 = arith.constant 0 : index
    %c0_32 = arith.constant 0 : index
    %c0_33 = arith.constant 0 : index
    %64 = vector.load %arg8[%c0_31, %c0_32, %c0_33] : memref<1x1x32xf32, #tpu.memory_space<vmem>>, vector<1x1x32xf32>
    %65 = vector.shape_cast %64 : vector<1x1x32xf32> to vector<1x32xf32>
    %66 = vector.broadcast %65 : vector<1x32xf32> to vector<8x32xf32>
    %67 = arith.addf %63, %66 : vector<8x32xf32>
    %68 = arith.truncf %67 : vector<8x32xf32> to vector<8x32xbf16>
    %c0_34 = arith.constant 0 : index
    %c0_35 = arith.constant 0 : index
    %c0_36 = arith.constant 0 : index
    %69 = vector.load %arg9[%c0_34, %c0_35, %c0_36] : memref<1x32x128xbf16, #tpu.memory_space<vmem>>, vector<1x32x128xbf16>
    %70 = vector.shape_cast %69 : vector<1x32x128xbf16> to vector<32x128xbf16>
    %cst_37 = arith.constant dense<0.000000e+00> : vector<8x128xf32>
    %71 = tpu.matmul %68, %70, %cst_37 {dimension_numbers = #tpu.dot_dimension_numbers<[1], [0], [0], [1], [0, 0, 1, 1], [], []>} : vector<8x32xbf16>, vector<32x128xbf16>, vector<8x128xf32> -> vector<8x128xf32>
    %c0_38 = arith.constant 0 : index
    %c0_39 = arith.constant 0 : index
    %c0_40 = arith.constant 0 : index
    %72 = vector.load %arg10[%c0_38, %c0_39, %c0_40] : memref<1x1x128xf32, #tpu.memory_space<vmem>>, vector<1x1x128xf32>
    %73 = vector.shape_cast %72 : vector<1x1x128xf32> to vector<1x128xf32>
    %74 = vector.broadcast %73 : vector<1x128xf32> to vector<8x128xf32>
    %75 = arith.addf %71, %74 : vector<8x128xf32>
    %cst_41 = arith.constant 0.000000e+00 : f32
    %76 = vector.broadcast %cst_41 : f32 to vector<8x128xf32>
    %77 = arith.maximumf %75, %76 : vector<8x128xf32>
    %78 = arith.truncf %77 : vector<8x128xf32> to vector<8x128xbf16>
    %c0_42 = arith.constant 0 : index
    %c0_43 = arith.constant 0 : index
    %c0_44 = arith.constant 0 : index
    %79 = vector.load %arg11[%c0_42, %c0_43, %c0_44] : memref<1x128x32xbf16, #tpu.memory_space<vmem>>, vector<1x128x32xbf16>
    %80 = vector.shape_cast %79 : vector<1x128x32xbf16> to vector<128x32xbf16>
    %cst_45 = arith.constant dense<0.000000e+00> : vector<8x32xf32>
    %81 = tpu.matmul %78, %80, %cst_45 {dimension_numbers = #tpu.dot_dimension_numbers<[1], [0], [0], [1], [0, 0, 1, 1], [], []>} : vector<8x128xbf16>, vector<128x32xbf16>, vector<8x32xf32> -> vector<8x32xf32>
    %c0_46 = arith.constant 0 : index
    %c0_47 = arith.constant 0 : index
    %c0_48 = arith.constant 0 : index
    %82 = vector.load %arg12[%c0_46, %c0_47, %c0_48] : memref<1x1x32xf32, #tpu.memory_space<vmem>>, vector<1x1x32xf32>
    %83 = vector.shape_cast %82 : vector<1x1x32xf32> to vector<1x32xf32>
    %84 = vector.broadcast %83 : vector<1x32xf32> to vector<8x32xf32>
    %85 = arith.addf %81, %84 : vector<8x32xf32>
    %86 = arith.addf %67, %85 : vector<8x32xf32>
    %cst_49 = arith.constant dense<0.000000e+00> : vector<8xf32>
    %87 = vector.multi_reduction <add>, %86, %cst_49 [1] : vector<8x32xf32> to vector<8xf32>
    %88 = vector.shape_cast %87 : vector<8xf32> to vector<8x1xf32>
    %cst_50 = arith.constant 3.200000e+01 : f32
    %89 = vector.broadcast %cst_50 : f32 to vector<8x1xf32>
    %90 = arith.divf %88, %89 : vector<8x1xf32>
    %91 = arith.mulf %86, %86 : vector<8x32xf32>
    %cst_51 = arith.constant dense<0.000000e+00> : vector<8xf32>
    %92 = vector.multi_reduction <add>, %91, %cst_51 [1] : vector<8x32xf32> to vector<8xf32>
    %93 = vector.shape_cast %92 : vector<8xf32> to vector<8x1xf32>
    %cst_52 = arith.constant 3.200000e+01 : f32
    %94 = vector.broadcast %cst_52 : f32 to vector<8x1xf32>
    %95 = arith.divf %93, %94 : vector<8x1xf32>
    %96 = vector.broadcast %90 : vector<8x1xf32> to vector<8x32xf32>
    %97 = arith.subf %86, %96 : vector<8x32xf32>
    %98 = arith.mulf %90, %90 : vector<8x1xf32>
    %99 = arith.subf %95, %98 : vector<8x1xf32>
    %cst_53 = arith.constant 9.99999974E-6 : f32
    %100 = vector.broadcast %cst_53 : f32 to vector<8x1xf32>
    %101 = arith.addf %99, %100 : vector<8x1xf32>
    %102 = math.rsqrt %101 : vector<8x1xf32>
    %103 = vector.broadcast %102 : vector<8x1xf32> to vector<8x32xf32>
    %104 = arith.mulf %97, %103 : vector<8x32xf32>
    %c0_54 = arith.constant 0 : index
    %c0_55 = arith.constant 0 : index
    %c0_56 = arith.constant 0 : index
    %105 = vector.load %arg13[%c0_54, %c0_55, %c0_56] : memref<1x1x32xf32, #tpu.memory_space<vmem>>, vector<1x1x32xf32>
    %106 = vector.shape_cast %105 : vector<1x1x32xf32> to vector<1x32xf32>
    %107 = vector.broadcast %106 : vector<1x32xf32> to vector<8x32xf32>
    %108 = arith.mulf %104, %107 : vector<8x32xf32>
    %c0_57 = arith.constant 0 : index
    %c0_58 = arith.constant 0 : index
    %c0_59 = arith.constant 0 : index
    %109 = vector.load %arg14[%c0_57, %c0_58, %c0_59] : memref<1x1x32xf32, #tpu.memory_space<vmem>>, vector<1x1x32xf32>
    %110 = vector.shape_cast %109 : vector<1x1x32xf32> to vector<1x32xf32>
    %111 = vector.broadcast %110 : vector<1x32xf32> to vector<8x32xf32>
    %112 = arith.addf %108, %111 : vector<8x32xf32>
    %c0_60 = arith.constant 0 : index
    %c0_61 = arith.constant 0 : index
    %113 = vector.load %arg18[%c0_60, %c0_61] : memref<8x32xf32, #tpu.memory_space<vmem>>, vector<8x32xf32>
    tpu.vector_store %arg18[%c0_60, %c0_61], %112 {strides = array<i32>} : memref<8x32xf32, #tpu.memory_space<vmem>>, vector<8x32xf32>,
    %c1_i32 = arith.constant 1 : i32
    %114 = arith.cmpi eq, %arg1, %c1_i32 : i32
    %115 = arith.extui %114 : i1 to i32
    %c0_i32_62 = arith.constant 0 : i32
    %116 = arith.cmpi ne, %115, %c0_i32_62 : i32
    scf.if %116 {
      %117 = arith.truncf %112 : vector<8x32xf32> to vector<8x32xbf16>
      %c0_63 = arith.constant 0 : index
      %c0_64 = arith.constant 0 : index
      %118 = vector.load %arg15[%c0_63, %c0_64] : memref<32x128xbf16, #tpu.memory_space<vmem>>, vector<32x128xbf16>
      %cst_65 = arith.constant dense<0.000000e+00> : vector<8x128xf32>
      %119 = tpu.matmul %117, %118, %cst_65 {dimension_numbers = #tpu.dot_dimension_numbers<[1], [0], [0], [1], [0, 0, 1, 1], [], []>} : vector<8x32xbf16>, vector<32x128xbf16>, vector<8x128xf32> -> vector<8x128xf32>
      %c0_66 = arith.constant 0 : index
      %c0_67 = arith.constant 0 : index
      %120 = vector.load %arg16[%c0_66, %c0_67] : memref<1x128xf32, #tpu.memory_space<vmem>>, vector<1x128xf32>
      %121 = vector.broadcast %120 : vector<1x128xf32> to vector<8x128xf32>
      %122 = arith.addf %119, %121 : vector<8x128xf32>
      %c0_68 = arith.constant 0 : index
      %c0_69 = arith.constant 0 : index
      %c0_70 = arith.constant 0 : index
      %123 = vector.load %arg17[%c0_68, %c0_69, %c0_70] : memref<1x8x128xf32, #tpu.memory_space<vmem>>, vector<1x8x128xf32>
      %124 = vector.shape_cast %123 : vector<1x8x128xf32> to vector<8x128xf32>
      %125 = vector.shape_cast %122 : vector<8x128xf32> to vector<1x8x128xf32>
      tpu.vector_store %arg17[%c0_68, %c0_69, %c0_70], %125 {strides = array<i32>} : memref<1x8x128xf32, #tpu.memory_space<vmem>>, vector<1x8x128xf32>,
    } else {
    }
    return
  }
  func.func @transform_0(%arg0: i32, %arg1: i32) -> (i32, i32, i32) {
    %c0_i32 = arith.constant 0 : i32
    %c0_i32_0 = arith.constant 0 : i32
    %c0_i32_1 = arith.constant 0 : i32
    return %arg0, %c0_i32, %c0_i32_0 : i32, i32, i32
  }
  func.func @transform_1(%arg0: i32, %arg1: i32) -> (i32, i32, i32) {
    %c0_i32 = arith.constant 0 : i32
    %c0_i32_0 = arith.constant 0 : i32
    %c0_i32_1 = arith.constant 0 : i32
    return %arg1, %c0_i32, %c0_i32_0 : i32, i32, i32
  }
  func.func @transform_2(%arg0: i32, %arg1: i32) -> (i32, i32, i32) {
    %c0_i32 = arith.constant 0 : i32
    %c0_i32_0 = arith.constant 0 : i32
    %c0_i32_1 = arith.constant 0 : i32
    return %arg1, %c0_i32, %c0_i32_0 : i32, i32, i32
  }
  func.func @transform_3(%arg0: i32, %arg1: i32) -> (i32, i32, i32) {
    %c0_i32 = arith.constant 0 : i32
    %c0_i32_0 = arith.constant 0 : i32
    %c0_i32_1 = arith.constant 0 : i32
    return %arg1, %c0_i32, %c0_i32_0 : i32, i32, i32
  }
  func.func @transform_4(%arg0: i32, %arg1: i32) -> (i32, i32, i32) {
    %c0_i32 = arith.constant 0 : i32
    %c0_i32_0 = arith.constant 0 : i32
    %c0_i32_1 = arith.constant 0 : i32
    return %arg1, %c0_i32, %c0_i32_0 : i32, i32, i32
  }
  func.func @transform_5(%arg0: i32, %arg1: i32) -> (i32, i32, i32) {
    %c0_i32 = arith.constant 0 : i32
    %c0_i32_0 = arith.constant 0 : i32
    %c0_i32_1 = arith.constant 0 : i32
    return %arg1, %c0_i32, %c0_i32_0 : i32, i32, i32
  }
  func.func @transform_6(%arg0: i32, %arg1: i32) -> (i32, i32, i32) {
    %c0_i32 = arith.constant 0 : i32
    %c0_i32_0 = arith.constant 0 : i32
    %c0_i32_1 = arith.constant 0 : i32
    return %arg1, %c0_i32, %c0_i32_0 : i32, i32, i32
  }
  func.func @transform_7(%arg0: i32, %arg1: i32) -> (i32, i32, i32) {
    %c0_i32 = arith.constant 0 : i32
    %c0_i32_0 = arith.constant 0 : i32
    %c0_i32_1 = arith.constant 0 : i32
    return %arg1, %c0_i32, %c0_i32_0 : i32, i32, i32
  }
  func.func @transform_8(%arg0: i32, %arg1: i32) -> (i32, i32, i32) {
    %c0_i32 = arith.constant 0 : i32
    %c0_i32_0 = arith.constant 0 : i32
    %c0_i32_1 = arith.constant 0 : i32
    return %arg1, %c0_i32, %c0_i32_0 : i32, i32, i32
  }
  func.func @transform_9(%arg0: i32, %arg1: i32) -> (i32, i32, i32) {
    %c0_i32 = arith.constant 0 : i32
    %c0_i32_0 = arith.constant 0 : i32
    %c0_i32_1 = arith.constant 0 : i32
    return %arg1, %c0_i32, %c0_i32_0 : i32, i32, i32
  }
  func.func @transform_10(%arg0: i32, %arg1: i32) -> (i32, i32, i32) {
    %c0_i32 = arith.constant 0 : i32
    %c0_i32_0 = arith.constant 0 : i32
    %c0_i32_1 = arith.constant 0 : i32
    return %arg1, %c0_i32, %c0_i32_0 : i32, i32, i32
  }
  func.func @transform_11(%arg0: i32, %arg1: i32) -> (i32, i32, i32) {
    %c0_i32 = arith.constant 0 : i32
    %c0_i32_0 = arith.constant 0 : i32
    %c0_i32_1 = arith.constant 0 : i32
    return %arg1, %c0_i32, %c0_i32_0 : i32, i32, i32
  }
  func.func @transform_12(%arg0: i32, %arg1: i32) -> (i32, i32, i32) {
    %c0_i32 = arith.constant 0 : i32
    %c0_i32_0 = arith.constant 0 : i32
    %c0_i32_1 = arith.constant 0 : i32
    return %arg1, %c0_i32, %c0_i32_0 : i32, i32, i32
  }
  func.func @transform_13(%arg0: i32, %arg1: i32) -> (i32, i32) {
    %c0_i32 = arith.constant 0 : i32
    %c0_i32_0 = arith.constant 0 : i32
    %c0_i32_1 = arith.constant 0 : i32
    return %c0_i32, %c0_i32_0 : i32, i32
  }
  func.func @transform_14(%arg0: i32, %arg1: i32) -> (i32, i32) {
    %c0_i32 = arith.constant 0 : i32
    %c0_i32_0 = arith.constant 0 : i32
    %c0_i32_1 = arith.constant 0 : i32
    return %c0_i32, %c0_i32_0 : i32, i32
  }
  func.func @transform_15(%arg0: i32, %arg1: i32) -> (i32, i32, i32) {
    %c0_i32 = arith.constant 0 : i32
    %c0_i32_0 = arith.constant 0 : i32
    %c0_i32_1 = arith.constant 0 : i32
    return %arg0, %c0_i32, %c0_i32_0 : i32, i32, i32
  }
}

</mosaic_0001>

<bundles_post_ra>
// kernel: tpu_custom_call.1
= control target key start
LH: loop header
LB: loop body
LE: loop exit
PB: predicated region body
PF: predicated region fallthrough
CT: control target
= control target key end

     0   :  { %s2897_s0 = inlined_call_operand.hbm [shape: f32[2,8,32], index: 0, kind: input, shape index: {}]   ;;  %s2898_s1 = inlined_call_operand.vmem [shape: bf16[2,32,32], index: 1, kind: input, shape index: {}]   ;;  %s2899_s2 = inlined_call_operand.vmem [shape: bf16[2,32,32], index: 2, kind: input, shape index: {}]   ;;  %s2900_s3 = inlined_call_operand.vmem [shape: bf16[2,32,32], index: 3, kind: input, shape index: {}]   ;;  %s2901_s4 = inlined_call_operand.vmem [shape: bf16[2,32,32], index: 4, kind: input, shape index: {}]   ;;  %s2902_s5 = inlined_call_operand.vmem [shape: f32[2,1,32], index: 5, kind: input, shape index: {}]   ;;  %s2903_s6 = inlined_call_operand.hbm [shape: f32[2,1,32], index: 6, kind: input, shape index: {}]   ;;  %s2904_s7 = inlined_call_operand.vmem [shape: bf16[2,32,128], index: 7, kind: input, shape index: {}]   ;;  %s2905_s8 = inlined_call_operand.hbm [shape: f32[2,1,128], index: 8, kind: input, shape index: {}]   ;;  %s2906_s9 = inlined_call_operand.vmem [shape: bf16[2,128,32], index: 9, kind: input, shape index: {}]   ;;  %s2907_s10 = inlined_call_operand.hbm [shape: f32[2,1,32], index: 10, kind: input, shape index: {}]   ;;  %s2908_s11 = inlined_call_operand.vmem [shape: f32[2,1,32], index: 11, kind: input, shape index: {}]   ;;  %s2909_s12 = inlined_call_operand.hbm [shape: f32[2,1,32], index: 12, kind: input, shape index: {}]   ;;  %s2910_s13 = inlined_call_operand.vmem [shape: bf16[32,128], index: 13, kind: input, shape index: {}]   ;;  %s2911_s14 = inlined_call_operand.vmem [shape: f32[1,128], index: 14, kind: input, shape index: {}]   ;;  %s2912_s15 = inlined_call_operand.hbm [shape: f32[2,8,128], index: 15, kind: output, shape index: {}]  }
   0x1   :  { %2930 = sst [smem:[#allocation31_spill]] %s2897_s0 }
   0x2   :  { %2931 = sst [smem:[#allocation32_spill]] %s2898_s1 }
   0x3   :  { %2932 = sst [smem:[#allocation33_spill]] %s2899_s2 }
   0x4   :  { %2933 = sst [smem:[#allocation34_spill]] %s2900_s3 }
   0x5   :  { %2934 = sst [smem:[#allocation35_spill]] %s2901_s4 }
   0x6   :  { %2935 = sst [smem:[#allocation36_spill]] %s2902_s5 }
   0x7   :  { %2936 = sst [smem:[#allocation37_spill]] %s2903_s6 }
   0x8   :  { %2937 = sst [smem:[#allocation38_spill]] %s2904_s7 }
   0x9   :  { %2938 = sst [smem:[#allocation39_spill]] %s2905_s8 }
   0xa   :  { %2939 = sst [smem:[#allocation40_spill]] %s2906_s9 }
   0xb   :  { %2940 = sst [smem:[#allocation41_spill]] %s2907_s10 }
   0xc   :  { %2941 = sst [smem:[#allocation42_spill]] %s2908_s11 }
   0xd   :  { %2942 = sst [smem:[#allocation43_spill]] %s2909_s12 }
   0xe   :  { %2943 = sst [smem:[#allocation44_spill]] %s2910_s13 }
   0xf   :  { %2944 = sst [smem:[#allocation45_spill]] %s2911_s14 }
  0x10   :  { %2945 = sst [smem:[#allocation46_spill]] %s2912_s15 }
  0x11   :  { %20 = vsyncpa [#allocation4], 0 }
  0x12   :  { %22 = vsyncpa [#allocation4 + $0x1], 0 }
  0x13   :  { %23 = vsyncpa [#allocation7], 0 }
  0x14   :  { %25 = vsyncpa [#allocation7 + $0x1], 0 }
  0x15   :  { %26 = vsyncpa [#allocation10], 0 }
  0x16   :  { %28 = vsyncpa [#allocation10 + $0x1], 0 }
  0x17   :  { %29 = vsyncpa [#allocation5], 0 }
  0x18   :  { %31 = vsyncpa [#allocation5 + $0x1], 0  ;;  %s2433_s18 = smov 0   ;;  %s2435_s19 = smov 0  }
  0x19   :  { %s2437_s20 = smov 0   ;;  %s2439_s21 = smov 0  }
  0x1a   :  { %s2441_s22 = smov 0   ;;  %s2443_s23 = smov 0  }
  0x1b   :  { %s2445_s24 = smov 0   ;;  %s2447_s25 = smov 0  }
  0x1c   :  { %s2449_s26 = smov 0   ;;  %s2451_s27 = smov 0  }
  0x1d   :  { %s2453_s28 = smov 0  }
  0x1e LB: > { %2946 = sst [smem:[#allocation17_spill]] %s2305_s19  ;;  %s46_s29 = sadd.s32 1, %s2333_s26  ;;  %s2341_s28 = sphi %s2453_s28, %s37_s28   ;;  %s2337_s27 = sphi %s2451_s27, %s3010_s27   ;;  %s2333_s26 = sphi %s2449_s26, %s3009_s26   ;;  %s2329_s25 = sphi %s2447_s25, %s3008_s25   ;;  %s2325_s24 = sphi %s2445_s24, %s3007_s24   ;;  %s2321_s23 = sphi %s2443_s23, %s3006_s23   ;;  %s2317_s22 = sphi %s2441_s22, %s3005_s22   ;;  %s2313_s21 = sphi %s2439_s21, %s3004_s21   ;;  %s2309_s20 = sphi %s2437_s20, %s3003_s20   ;;  %s2305_s19 = sphi %s2435_s19, %s3002_s19   ;;  %s2301_s18 = sphi %s2433_s18, %s3001_s18  }
  0x1f   : > { %2947 = sst [smem:[#allocation18_spill]] %s2309_s20  ;;  %p64_p0 = scmp.eq.s32.totalorder %s2341_s28, 0 }
  0x20   : > { %2948 = sst [smem:[#allocation19_spill]] %s2317_s22  ;;  %p2490_p1 = scmp.ge.s32.totalorder %s46_s29, 2 }
  0x21   : > { %2949 = sst [smem:[#allocation20_spill]] %s2321_s23  ;;  %s212_s16 = sadd.s32 1, %s2309_s20 }
  0x22   : > { %2950 = sst [smem:[#allocation21_spill]] %s2325_s24  ;;  %p219_p2 = scmp.ne.s32.totalorder %s2309_s20, %s2305_s19 }
  0x23   : > { %2951 = sst [smem:[#allocation22_spill]] %s2329_s25  ;;  %p225_p3 = scmp.ne.s32.totalorder %s2305_s19, %s2301_s18 }
  0x24   : > { %2952 = sst [smem:[#allocation23_spill]] %s2333_s26  ;;  %s3012_s29 = smov (%p2490_p1, %s46_s29), 0 }
  0x25   : > { %2953 = sst [smem:[#allocation24_spill]] %s2337_s27  ;;  %p221_p4 = por %p219_p2, %p64_p0 }
  0x26   : > { %2955 = sst [smem:[#allocation25_spill]] %s3012_s29  ;;  %s209_s17 = ssub.s32 %s2333_s26, %s3012_s29 }
  0x27   : > { %p2916_p5 = scmp.lt.s32.totalorder %s2341_s28, 4  ;;  %p210_p6 = scmp.eq.s32.totalorder %s209_s17, 0 }
  0x28   : > { %s2917_s15 = sand.u32 1, %s2341_s28   ;;  %s2510_s25 = sand.u32 1, %s2309_s20  }
  0x29   : > { %s2513_s14 = scalar_select %p210_p6, %s2309_s20, %s212_s16  }
  0x2a   : > { %s2516_s13 = sshll.u32 %s2333_s26, 4  ;;  %s2957_s6 = sld [smem:[#allocation37_spill]] }
  0x2b   : > { %2956 = sst [smem:[#allocation26_spill]] %s2513_s14  ;;  %s538_s4 = scalar_lea.vmem [#allocation6], %s2510_s25 }
  0x2c   : > { %s545_s3 = sshll.u32 %s538_s4, 4  ;;  %p2525_p7 = pnand %p2916_p5, %p221_p4  ;;  %s546_s3 = int_to_ptr.vmem [resolvable:$true] %s545_s3 }
  0x2d   : > { %p1746_p8 = scmp.ge.s32.totalorder %s2341_s28, 1  ;;  %p623_p9 = scmp.lt.s32.totalorder %s2341_s28, 5 }
  0x2e   : > { %s2533_s16 = scalar_lea.sflag [#allocation7], %s2917_s15  ;;  %p2920_p10 = pneg %p2525_p7 }
  0x2f   : > { %s2086_s17 = scalar_lea.vmem %s546_s3, 16  ;;  %s2343_s4 = smov [#allocation6]  }
  0x30   : > { %s543_s7 = scalar_lea.hbm %s2957_s6, %s2516_s13  ;;  %p2087_p11 = scmp.ne.s32.totalorder %s546_s3, %s2086_s17 }
  0x31   : > { %s2091_s9 = sshll.u32 %s2343_s4, 4  ;;  %s2092_s9 = int_to_ptr.vmem [resolvable:$false] %s2091_s9 }
  0x32   : > { %p2089_p12 = pnand %p2087_p11, %p2920_p10  ;;  %s2093_s11 = scalar_lea.vmem %s2092_s9, 32 }
  0x33   : > { %p2094_p2 = scmp.lt.s32.totalorder %s546_s3, %s2092_s9  ;;  %p2095_p4 = scmp.lt.s32.totalorder %s2093_s11, %s2086_s17 }
  0x34   : > { %p2090_p13 = pneg %p2089_p12 }
  0x35   : > { %p2096_p6 = por %p2095_p4, %p2094_p2 }
  0x37   : > { %p2097_p5 = pnand %p2096_p6, %p2090_p13 }
  0x39   : > { %2100 = shalt.err (!%p2097_p5)
}
  0x3a   : > { %1937 = dma.hbm_to_vmem [thread:$0]  (!%p2525_p7), %s543_s7, 16, %s546_s3, %s2533_s16  }
  0x3b   : > { %p2547_p11 = pnand %p1746_p8, %p623_p9  ;;  %s2960_s10 = sld [smem:[#allocation41_spill]] }
  0x3c   : > { %s588_s15 = scalar_lea.vmem [#allocation9], %s2510_s25  ;;  %s2961_s26 = sand.u32 1, %s2341_s28  }
  0x3d   : > { %s595_s6 = sshll.u32 %s588_s15, 4  ;;  %s2558_s14 = scalar_lea.sflag [#allocation10], %s2961_s26  ;;  %s596_s6 = int_to_ptr.vmem [resolvable:$true] %s595_s6 }
  0x3e   : > { %s2114_s20 = scalar_lea.vmem %s596_s6, 16  ;;  %s2344_s3 = smov [#allocation9]  }
  0x3f   : > { %p2115_p5 = scmp.ne.s32.totalorder %s596_s6, %s2114_s20  ;;  %s2119_s7 = sshll.u32 %s2344_s3, 4  ;;  %s2120_s7 = int_to_ptr.vmem [resolvable:$false] %s2119_s7 }
  0x40   : > { %s2121_s2 = scalar_lea.vmem %s2120_s7, 32  ;;  %p2122_p8 = scmp.lt.s32.totalorder %s596_s6, %s2120_s7 }
  0x41   : > { %s593_s11 = scalar_lea.hbm %s2960_s10, %s2516_s13  ;;  %p2117_p12 = pnand %p2115_p5, %p2920_p10 }
  0x42   : > { %p2123_p9 = scmp.lt.s32.totalorder %s2121_s2, %s2114_s20 }
  0x43   : > { %p2118_p13 = pneg %p2117_p12 }
  0x44   : > { %p2124_p2 = por %p2123_p9, %p2122_p8 }
  0x46   : > { %p2125_p4 = pnand %p2124_p2, %p2118_p13 }
  0x48   : > { %2128 = shalt.err (!%p2125_p4)
}
  0x49   : > { %1943 = dma.hbm_to_vmem [thread:$0]  (!%p2525_p7), %s593_s11, 16, %s596_s6, %s2558_s14  }
  0x4a   : > { %s2567_s2 = sadd.s32 4294967295, %s2341_s28   ;;  %s1737_s15 = sadd.s32 4294967294, %s2341_s28  }
  0x4b   : > { %s49_s20 = sadd.s32 1, %s2337_s27  ;;  %s56_s26 = sadd.s32 1, %s2321_s23 }
  0x4c   : > { %s3014_s20 = smov (!%p2490_p1, %s49_s20), %s2337_s27  ;;  %p63_p6 = scmp.ne.s32.totalorder %s2321_s23, %s2317_s22 }
  0x4d   : > { %p51_p5 = scmp.ge.s32.totalorder %s3014_s20, 2  ;;  %p69_p12 = scmp.ne.s32.totalorder %s2317_s22, %s2313_s21 }
  0x4e   : > { %p2581_p13 = por %p64_p0, %p63_p6  ;;  %p70_p8 = scmp.eq.s32.totalorder %s2567_s2, 0 }
  0x4f   : > { %s3016_s20 = smov (%p51_p5, %s3014_s20), 0  ;;  %p447_p0 = scmp.eq.s32.totalorder %s2567_s2, 3 }
  0x50   : > { %2963 = sst [smem:[#allocation27_spill]] %s3016_s20  ;;  %p2591_p1 = por %p70_p8, %p69_p12 }
  0x51   : > { %p2598_p9 = por %p225_p3, %p70_p8  ;;  %s53_s9 = ssub.s32 %s2337_s27, %s3016_s20 }
  0x52   : > { %p54_p2 = scmp.eq.s32.totalorder %s53_s9, 0  ;;  %p453_p4 = scmp.eq.s32.totalorder %s1737_s15, 3 }
  0x53   : > { %p2605_p5 = por %p447_p0, %p63_p6  ;;  %s479_s3 = sand.u32 1, %s2321_s23  }
  0x54   : > { %s2611_s7 = scalar_select %p54_p2, %s2321_s23, %s56_s26  }
  0x55   : > { %s2966_s11 = scalar_select %p2605_p5, 1, 0 }
  0x56   : > { %2968 = sst [smem:[#allocation29_spill]] %s2611_s7  ;;  %p2616_p10 = por %p453_p4, %p69_p12 }
  0x57   : > { %2967 = sst [smem:[#allocation28_spill]] %s2966_s11  ;;  %s1740_s18 = sshll.u32 %s479_s3, 3 }
  0x58   : > { %s2969_s10 = scalar_select %p2616_p10, 1, 0 }
  0x59   : > { %s1741_s1 = sshll.u32 %s2337_s27, 7  ;;  %s2971_s0 = sld [smem:[#allocation31_spill]] }
  0x5a   : > { %2970 = sst [smem:[#allocation30_spill]] %s2969_s10  ;;  %s483_s9 = scalar_lea.vmem [#allocation3], %s1740_s18 }
  0x5b   : > { %s490_s15 = sshll.u32 %s483_s9, 4  ;;  %p2972_p3 = scmp.lt.s32.totalorder %s2341_s28, 4  ;;  %s491_s15 = int_to_ptr.vmem [resolvable:$true] %s490_s15 }
  0x5c   : > { %s2974_s8 = sld [smem:[#allocation39_spill]]  ;;  %s480_s10 = scalar_lea.sflag [#allocation4], %s479_s3 }
  0x5d   : > { %p2628_p6 = pnand %p2972_p3, %p2581_p13  ;;  %s2142_s27 = scalar_lea.vmem %s491_s15, 128 }
  0x5e   : > { %p2143_p8 = scmp.ne.s32.totalorder %s491_s15, %s2142_s27 }
  0x5f   : > { %s488_s20 = scalar_lea.hbm %s2971_s0, %s1741_s1  ;;  %p2131_p12 = pneg %p2628_p6 }
  0x60   : > { %s2345_s1 = smov [#allocation3]  }
  0x61   : > { %p2145_p0 = pnand %p2143_p8, %p2131_p12  ;;  %s2147_s5 = sshll.u32 %s2345_s1, 4  ;;  %s2148_s5 = int_to_ptr.vmem [resolvable:$false] %s2147_s5 }
  0x62   : > { %s568_s23 = scalar_lea.hbm %s2974_s8, %s2516_s13  ;;  %s2149_s24 = scalar_lea.vmem %s2148_s5, 256 }
  0x63   : > { %p2146_p2 = pneg %p2145_p0  ;;  %p2150_p13 = scmp.lt.s32.totalorder %s491_s15, %s2148_s5 }
  0x64   : > { %p2151_p4 = scmp.lt.s32.totalorder %s2149_s24, %s2142_s27 }
  0x66   : > { %p2152_p3 = por %p2151_p4, %p2150_p13 }
  0x68   : > { %p2153_p10 = pnand %p2152_p3, %p2146_p2 }
  0x6a   : > { %2156 = shalt.err (!%p2153_p10)
}
  0x6b   : > { %1934 = dma.hbm_to_vmem [thread:$0]  (!%p2628_p6), %s488_s20, 128, %s491_s15, %s480_s10  }
  0x6c   : > { %s563_s6 = scalar_lea.vmem [#allocation8], %s2510_s25  ;;  %s2975_s12 = sld [smem:[#allocation43_spill]] }
  0x6d   : > { %s570_s3 = sshll.u32 %s563_s6, 4  ;;  %p2976_p8 = pneg %p2525_p7  ;;  %s571_s3 = int_to_ptr.vmem [resolvable:$true] %s570_s3 }
  0x6e   : > { %s2170_s26 = scalar_lea.vmem %s571_s3, 16  ;;  %s2346_s27 = smov [#allocation8]  }
  0x6f   : > { %p2171_p12 = scmp.ne.s32.totalorder %s571_s3, %s2170_s26  ;;  %s2175_s1 = sshll.u32 %s2346_s27, 4  ;;  %s2176_s1 = int_to_ptr.vmem [resolvable:$false] %s2175_s1 }
  0x70   : > { %s2177_s11 = scalar_lea.vmem %s2176_s1, 32  ;;  %p2178_p10 = scmp.lt.s32.totalorder %s571_s3, %s2176_s1 }
  0x71   : > { %p2173_p0 = pnand %p2171_p12, %p2976_p8  ;;  %p2179_p13 = scmp.lt.s32.totalorder %s2177_s11, %s2170_s26 }
  0x72   : > { %s616_s9 = scalar_lea.hbm %s2975_s12, %s2516_s13 }
  0x73   : > { %p2174_p2 = pneg %p2173_p0  ;;  %p2180_p6 = por %p2179_p13, %p2178_p10 }
  0x75   : > { %p2181_p4 = pnand %p2180_p6, %p2174_p2 }
  0x77   : > { %2184 = shalt.err (!%p2181_p4)
}
  0x78   : > { %1940 = dma.hbm_to_vmem [thread:$0]  (!%p2525_p7), %s568_s23, 16, %s571_s3, %s2533_s16  }
  0x79   : > { %s611_s15 = scalar_lea.vmem [#allocation11], %s2510_s25  ;;  %p2977_p12 = pmov %p2976_p8 }
  0x7a   : > { %s618_s5 = sshll.u32 %s611_s15, 4  ;;  %s2347_s6 = smov [#allocation11]   ;;  %s619_s5 = int_to_ptr.vmem [resolvable:$true] %s618_s5 }
  0x7b   : > { %s2198_s24 = scalar_lea.vmem %s619_s5, 16  ;;  %s2203_s7 = sshll.u32 %s2347_s6, 4  ;;  %s2204_s7 = int_to_ptr.vmem [resolvable:$false] %s2203_s7 }
  0x7c   : > { %p2199_p3 = scmp.ne.s32.totalorder %s619_s5, %s2198_s24  ;;  %s2205_s18 = scalar_lea.vmem %s2204_s7, 32 }
  0x7d   : > { %p2206_p2 = scmp.lt.s32.totalorder %s619_s5, %s2204_s7  ;;  %p2207_p10 = scmp.lt.s32.totalorder %s2205_s18, %s2198_s24 }
  0x7e   : > { %p2201_p8 = pnand %p2199_p3, %p2977_p12 }
  0x7f   : > { %p2208_p13 = por %p2207_p10, %p2206_p2 }
  0x80   : > { %p2202_p0 = pneg %p2201_p8 }
  0x82   : > { %p2209_p6 = pnand %p2208_p13, %p2202_p0 }
  0x84   : > { %2212 = shalt.err (!%p2209_p6)
}
  0x85   : > { %1946 = dma.hbm_to_vmem [thread:$0]  (!%p2525_p7), %s616_s9, 16, %s619_s5, %s2558_s14  }
  0x86   : > { %627 = sbr.rel (%p2547_p11) target bundleno = 2247 (0x8c7), region = 80  ;;  %s2671_s16 = sand.u32 (!%p2547_p11), 1, %s2317_s22  }
  0x87   : > { %s1747_s3 = sshll.u32 (!%p2547_p11), %s2671_s16, 3  ;;  %s630_s26 = scalar_lea.sflag (!%p2547_p11), [#allocation4], %s2671_s16 }
  0x88   : > { %s633_s27 = scalar_lea.vmem (!%p2547_p11), [#allocation3], %s1747_s3 }
  0x8b   : > { %2284 = dma.done.wait (%p2591_p1), %s630_s26, 128  }
  0x8c   : > { %2286 = vsyncadd (%p2591_p1), %s630_s26, 4294967168  ;;  %s638_s13 = sand.u32 1, %s2567_s2   ;;  %s2681_s14 = sand.u32 1, %s2305_s19  }
  0x8d   : > { %s639_s29 = scalar_lea.sflag [#allocation7], %s638_s13 }
  0x8e   : > { %2288 = dma.done.wait (%p2598_p9), %s639_s29, 32  }
  0x8f   : > { %2290 = vsyncadd (%p2598_p9), %s639_s29, 4294967264  ;;  %s655_s30 = scalar_lea.sflag [#allocation10], %s638_s13 }
  0x90   : > { %2292 = dma.done.wait (%p2598_p9), %s655_s30, 32  }
  0x91   : > { %2294 = vsyncadd (%p2598_p9), %s655_s30, 4294967264  ;;  %s2978_s2 = sld [smem:[#allocation21_spill]]  ;;  %s665_s22 = scalar_lea.vmem [#allocation11], %s2681_s14 }
  0x92   : > { %s2980_s18 = sld [smem:[#allocation32_spill]]  ;;  %s2737_s19 = scalar_lea.vmem [#allocation12], %s1747_s3 }
  0x93   : > { %s2981_s26 = sld [smem:[#allocation33_spill]] }
  0x94   : > { %s2982_s1 = sld [smem:[#allocation34_spill]] }
  0x95   : > { %s2983_s8 = sld [smem:[#allocation35_spill]] }
  0x96   : > { %s2984_s5 = sld [smem:[#allocation38_spill]] }
  0x97   : > { %p764_p7 = scmp.lt.s32.totalorder %s2978_s2, 1  ;;  %s2985_s25 = sld [smem:[#allocation40_spill]] }
  0x98   : > { %p1761_p11 = scmp.ne.s32.totalorder %s2978_s2, 0 }
  0x99   : > { %s2696_s11 = scalar_select %p764_p7, %s2978_s2, 1 }
  0x9b   : > { %s1802_s10 = sshll.u32 %s2696_s11, 4  ;;  %s1807_s7 = sshll.u32 %s2696_s11, 6 }
  0x9c   : > { %s768_s17 = scalar_lea.vmem %s2980_s18, %s1802_s10  ;;  %s2709_s13 = scalar_lea.vmem %s2981_s26, %s1802_s10 }
  0x9d   : > { %s2714_s9 = scalar_lea.vmem %s2982_s1, %s1802_s10  ;;  %s2719_s12 = scalar_lea.vmem %s2983_s8, %s1802_s10 }
  0x9e   : > { %s2724_s6 = scalar_lea.vmem %s2984_s5, %s1802_s10  ;;  %s2730_s26 = scalar_lea.vmem %s2985_s25, %s1807_s7 }
  0x9f   : > { %s2986_s1 = sld [smem:[#allocation42_spill]] }
  0xa1   : > { %804 = sbr.rel (%p1761_p11) target bundleno = 168 (0xa8), region = 104 }
  0xa5   : > { %s799_s30 = scalar_lea.vmem %s2986_s1, %s2696_s11 }
  0xa6   : > { %v805_v0 = vld [vmem:[%s633_s27] sm:$0xff]  ;;  %vm806_vm0 = vcmask 261120  }
  0xa7   : > { %807 = vst.msk [vmem:[#allocation2] sm:$0xff] %vm806_vm0, %v805_v0 }
  0xa8 PF: > { %v2045_v1 = vld [vmem:[%s768_s17 + $0x8] sm:$0xff]   ;;  %v2348_v2 = vmov 0.0   ;;  %v2046_v3 = vld [vmem:[%s768_s17] sm:$0xff]   ;;  %vm2349_vm1 = vmmov 0   ;;  %vm826_vm2 = vcmask 261120   ;;  %v1030_v21 = vlaneseq  ;;  %v2055_v62 = vld [vmem:[%s2730_s26 + $0x38] sm:$0xff]  }
  0xa9   : > { %1839 = vmatprep.subr.bf16.mxu0 %v2348_v2  ;;  %1863 = vmatprep.subr.bf16.mxu1 %v2348_v2  ;;  %v2047_v5 = vld [vmem:[%s2709_s13 + $0x8] sm:$0xff]   ;;  %v2048_v7 = vld [vmem:[%s2709_s13] sm:$0xff]   ;;  %vm1038_vm5 = vcmask 64512   ;;  %vm1055_vm7 = vcmask 1043456   ;;  %v2056_v63 = vld [vmem:[%s2730_s26 + $0x30] sm:$0xff]   ;;  %s2989_s27 = scalar_lea.vmem [#allocation6], %s2681_s14 }
  0xaa   : > { %1840 = vmatpush3.bf16.msra.mxu0 %v2045_v1  ;;  %1843 = vmatprep.mubr.msk.bf16.mxu0 %vm2349_vm1, %v2348_v2  ;;  %v2049_v19 = vld [vmem:[%s2714_s9 + $0x8] sm:$0xff]   ;;  %v2050_v20 = vld [vmem:[%s2714_s9] sm:$0xff]   ;;  %v1031_v22 = vshrl.u32 %v1030_v21, 7  ;;  %v1033_v23 = vand.u32 127, %v1030_v21  ;;  %s2990_s4 = scalar_lea.vmem [#allocation8], %s2681_s14  ;;  %s2991_s9 = scalar_lea.vmem [#allocation9], %s2681_s14 }
  0xab   : > { %1841 = vmatprep.subr.bf16.mxu0 %v2348_v2  ;;  %1865 = vmatprep.mubr.msk.bf16.mxu1 %vm2349_vm1, %v2348_v2  ;;  %v2051_v41 = vld [vmem:[%s2719_s12 + $0x8] sm:$0xff]   ;;  %v2052_v46 = vld [vmem:[%s2719_s12] sm:$0xff]   ;;  %s2987_s12 = sld [smem:[#allocation36_spill]] }
  0xac   : > { %vm1034_vm3 = vcmp.gt.s32.totalorder %v1033_v23, %v1031_v22  ;;  %v2053_v60 = vld [vmem:[%s2724_s6 + $0x8] sm:$0xff]   ;;  %v2054_v61 = vld [vmem:[%s2724_s6] sm:$0xff]   ;;  %s2993_s17 = sld [smem:[#allocation21_spill]] }
  0xad   : > { %v2057_v0 = vld [vmem:[%s2730_s26 + $0x28] sm:$0xff]   ;;  %v2058_v1 = vld [vmem:[%s2730_s26 + $0x20] sm:$0xff]  }
  0xae   : > { %v2744_v4 = vld [vmem:[#allocation2] sm:$0xff]  ;;  %1842 = vmatpush3.bf16.msra.mxu0 %v2046_v3  ;;  %v2059_v3 = vld [vmem:[%s2730_s26 + $0x18] sm:$0xff]  }
  0xaf   : > { %v809_v6 = vpack.c.bf16 %v2744_v4, %v2744_v4  ;;  %1847 = vmatprep.subr.bf16.mxu0 %v2348_v2  ;;  %v2062_v21 = vld [vmem:[%s2730_s26] sm:$0xff]  }
  0xb0   : > { %v1778_v22 = vld [vmem:[%s2990_s4] ss:$0 sm:$0xff] }
  0xb1   : > { %1844 = vmatmul.mubr.msk.bf16.vlgmr.msra.gmra.mxu0 %vm826_vm2, %v809_v6  ;;  %s2988_s3 = scalar_lea.vmem %s2987_s12, %s2696_s11 }
  0xb2   : > { %1848 = vmatpush3.bf16.msra.mxu0 %v2047_v5  ;;  %1851 = vmatprep.mubr.msk.bf16.mxu0 %vm2349_vm1, %v2348_v2  ;;  %p1793_p1 = scmp.ne.s32.totalorder %s2993_s17, 1 }
  0xb3   : > { %1849 = vmatprep.subr.bf16.mxu0 %v2348_v2  ;;  %s2994_s15 = sld [smem:[#allocation44_spill]] (!%p1793_p1) }
  0xb4   : > { %s2995_s6 = sld [smem:[#allocation45_spill]] (!%p1793_p1) }
  0xb6   : > { %1850 = vmatpush3.bf16.msra.mxu0 %v2048_v7 }
  0xb7   : > { %1855 = vmatprep.subr.bf16.mxu0 %v2348_v2 }
  0xb9   : > { %1852 = vmatmul.mubr.msk.bf16.vlgmr.msra.gmra.mxu0 %vm826_vm2, %v809_v6 }
  0xba   : > { %1859 = vmatprep.mubr.msk.bf16.mxu0 %vm2349_vm1, %v2348_v2  ;;  %1856 = vmatpush3.bf16.msra.mxu0 %v2049_v19 }
  0xbb   : > { %1857 = vmatprep.subr.bf16.mxu0 %v2348_v2 }
  0xbe   : > { %1858 = vmatpush3.bf16.msra.mxu0 %v2050_v20  ;;  %v2061_v20 = vld [vmem:[%s2730_s26 + $0x8] sm:$0xff]  }
  0xbf   : > { %1869 = vmatprep.subr.bf16.mxu0 %v2348_v2 }
  0xc1   : > { %1860 = vmatmul.mubr.msk.bf16.vlgmr.msra.gmra.mxu0 %vm826_vm2, %v809_v6 }
  0xc2   : > { %1871 = vmatprep.mubr.msk.bf16.mxu0 %vm2349_vm1, %v2348_v2 }
 0x171   : > { %v864_v8 = vpop.f32.mrf.mxu0 }
 0x172   : > { %v983_v9 = vpack.c.bf16 %v864_v8, %v864_v8 }
 0x173   : > { %v1845_v10 = vpop.f32.mrf.mxu0 }
 0x174   : > { %v988_v11 = vsel %vm826_vm2, %v983_v9, 0 }
 0x175   : > { %v867_v12 = vpop.f32.mrf.mxu0  ;;  %1864 = vmatpush3.bf16.xpose.msra.mxu1 %v988_v11 }
 0x176   : > { %1875 = vmatprep.subr.bf16.mxu1 %v2348_v2 }
 0x177   : > { %v1846_v13 = vpop.f32.mrf.mxu0 }
 0x179   : > { %v920_v14 = vpop.f32.mrf.mxu0 }
 0x17a   : > { %v982_v15 = vpack.c.bf16 %v920_v14, %v920_v14  ;;  %v1776_v14 = vld [vmem:[%s2988_s3] ss:$0 sm:$0xff] }
 0x17b   : > { %v1853_v16 = vpop.f32.mrf.mxu0 }
 0x17c   : > { %1866 = vmatmul.mubr.msk.bf16.vlgmr.msra.gmra.mxu1 %vm826_vm2, %v982_v15  ;;  %v1777_v16 = vld [vmem:[%s2989_s27] ss:$0 sm:$0xff] }
 0x17d   : > { %v923_v17 = vpop.f32.mrf.mxu0  ;;  %1879 = vmatprep.mubr.msk.bf16.mxu1 %vm2349_vm1, %v2348_v2  ;;  %1876 = vmatpush3.bf16.msra.mxu1 %v2051_v41 }
 0x17e   : > { %1877 = vmatprep.subr.bf16.mxu1 %v2348_v2 }
 0x17f   : > { %v1854_v18 = vpop.f32.mrf.mxu0 }
 0x181   : > { %v976_v35 = vpop.f32.mrf.mxu0  ;;  %1878 = vmatpush3.bf16.msra.mxu1 %v2052_v46 }
 0x182   : > { %v1051_v36 = vpack.c.bf16 %v976_v35, %v976_v35  ;;  %1891 = vmatprep.subr.bf16.mxu1 %v2348_v2 }
 0x183   : > { %v1861_v37 = vpop.f32.mrf.mxu0 }
 0x184   : > { %v1057_v38 = vsel %vm1055_vm7, %v1051_v36, 0 }
 0x185   : > { %v979_v39 = vpop.f32.mrf.mxu0  ;;  %1870 = vmatpush3.bf16.msra.mxu0 %v1057_v38 }
 0x186   : > { %1883 = vmatprep.subr.bf16.mxu0 %v2348_v2 }
 0x187   : > { %v1862_v40 = vpop.f32.mrf.mxu0 }
 0x23c   : > { %v1024_v24 = vpop.f32.mrf.mxu1 }
 0x23d   : > { %vm1035_vm4 = vcmp.eq.f32.partialorder %v1024_v24, 0.0 }
 0x23e   : > { %v1867_v25 = vpop.f32.mrf.mxu1  ;;  %vm1036_vm6 = vmand %vm1034_vm3, %vm1035_vm4 }
 0x23f   : > { %v1037_v26 = vsel %vm1036_vm6, -inf, %v1024_v24 }
 0x240   : > { %v1027_v27 = vpop.f32.mrf.mxu1  ;;  %v1039_v28 = vsel %vm1038_vm5, %v1037_v26, -inf }
 0x241   : > { %1040 = vmax.xlane.f32.xlu0 %v1039_v28 }
 0x242   : > { %v1868_v29 = vpop.f32.mrf.mxu1 }
 0x2ca   : > { %v1041_v30 = vpop.xlane.xlu0 %1040 }
 0x2cb   : > { %v1042_v31 = vsub.f32 %v1037_v26, %v1041_v30  ;;  %v1782_v30 = vld [vmem:[%s2991_s9] ss:$0 sm:$0xff] }
 0x2cd   : > { %v1043_v32 = vmul.f32 1.442695, %v1042_v31 }
 0x2cf   : > { %2063 = vpow2.f32 %v1043_v32 }
 0x2dc   : > { %v2064_v33 = vpop.eup %2063 }
 0x2dd   : > { %v1045_v34 = vsel %vm1038_vm5, %v2064_v33, 0.0 }
 0x2de   : > { %1046 = vadd.xlane.f32.xlu0 %v1045_v34 }
 0x367   : > { %v1047_v42 = vpop.xlane.xlu0 %1046 }
 0x368   : > { %2065 = vrcp.f32 %v1047_v42 }
 0x375   : > { %v2066_v43 = vpop.eup %2065 }
 0x376   : > { %v1049_v44 = vmul.f32 %v2066_v43, %v2064_v33 }
 0x378   : > { %v1050_v45 = vpack.c.bf16 %v1049_v44, %v1049_v44 }
 0x37a   : > { %1872 = vmatmul.mubr.msk.bf16.vlgmr.msra.gmra.mxu0 %vm1038_vm5, %v1050_v45 }
 0x37b   : > { %1887 = vmatprep.mubr.msk.bf16.mxu0 %vm2349_vm1, %v2348_v2  ;;  %1884 = vmatpush3.bf16.msra.mxu0 %v2053_v60 }
 0x37c   : > { %1885 = vmatprep.subr.bf16.mxu0 %v2348_v2 }
 0x37f   : > { %1886 = vmatpush3.bf16.msra.mxu0 %v2054_v61 }
 0x43a   : > { %v1093_v47 = vpop.f32.mrf.mxu0 }
 0x43b   : > { %v1099_v48 = vpack.c.bf16 %v1093_v47, %v1093_v47 }
 0x43c   : > { %v1873_v49 = vpop.f32.mrf.mxu0 }
 0x43d   : > { %1880 = vmatmul.mubr.msk.bf16.vlgmr.msra.gmra.mxu1 %vm826_vm2, %v1099_v48  ;;  %v1791_v48 = vld [vmem:[%s799_s30] ss:$0 sm:$0xff] }
 0x43e   : > { %v1096_v50 = vpop.f32.mrf.mxu0  ;;  %1907 = vmatprep.mubr.msk.bf16.mxu1 %vm2349_vm1, %v2348_v2  ;;  %1892 = vmatpush3.bf16.msra.mxu1 %v2055_v62 }
 0x43f   : > { %1893 = vmatprep.subr.bf16.mxu1 %v2348_v2  ;;  %v1792_v50 = vld [vmem:[%s665_s22] ss:$0 sm:$0xff] }
 0x440   : > { %v1874_v51 = vpop.f32.mrf.mxu0 }
 0x442   : > { %1894 = vmatpush3.bf16.msra.mxu1 %v2056_v63 }
 0x443   : > { %1895 = vmatprep.subr.bf16.mxu1 %v2348_v2 }
 0x446   : > { %1896 = vmatpush3.bf16.msra.mxu1 %v2057_v0 }
 0x447   : > { %1897 = vmatprep.subr.bf16.mxu1 %v2348_v2 }
 0x44a   : > { %1898 = vmatpush3.bf16.msra.mxu1 %v2058_v1 }
 0x44b   : > { %1899 = vmatprep.subr.bf16.mxu1 %v2348_v2 }
 0x44e   : > { %1900 = vmatpush3.bf16.msra.mxu1 %v2059_v3 }
 0x44f   : > { %1901 = vmatprep.subr.bf16.mxu1 %v2348_v2 }
 0x4fd   : > { %v1153_v52 = vpop.f32.mrf.mxu1 }
 0x4fe   : > { %v1159_v53 = vadd.f32 %v1153_v52, %v2744_v4  ;;  %v2060_v4 = vld [vmem:[%s2730_s26 + $0x10] sm:$0xff]  }
 0x4ff   : > { %v1881_v54 = vpop.f32.mrf.mxu1  ;;  %1902 = vmatpush3.bf16.msra.mxu1 %v2060_v4 }
 0x500   : > { %v1160_v55 = vsel %vm826_vm2, %v1159_v53, 0.0  ;;  %v1165_v56 = vmul.f32 %v1159_v53, %v1159_v53  ;;  %1903 = vmatprep.subr.bf16.mxu1 %v2348_v2 }
 0x501   : > { %1161 = vadd.xlane.f32.xlu1 %v1160_v55  ;;  %v1156_v57 = vpop.f32.mrf.mxu1 }
 0x502   : > { %v1166_v59 = vsel %vm826_vm2, %v1165_v56, 0.0 }
 0x503   : > { %v1882_v58 = vpop.f32.mrf.mxu1  ;;  %1904 = vmatpush3.bf16.msra.mxu1 %v2061_v20 }
 0x504   : > { %1905 = vmatprep.subr.bf16.mxu1 %v2348_v2 }
 0x505   : > { %1167 = vadd.xlane.f32.xlu1 %v1166_v59 }
 0x507   : > { %1906 = vmatpush3.bf16.msra.mxu1 %v2062_v21 }
 0x58a   : > { %v1162_v5 = vpop.xlane.xlu1 %1161 }
 0x58b   : > { %v1164_v6 = vmul.f32 0.03125, %v1162_v5 }
 0x58d   : > { %v1171_v8 = vmul.f32 %v1164_v6, %v1164_v6  ;;  %v1170_v12 = vsub.f32 %v1159_v53, %v1164_v6 }
 0x58e   : > { %v1168_v7 = vpop.xlane.xlu1 %1167 }
 0x58f   : > { %v1169_v9 = vmul.f32 0.03125, %v1168_v7 }
 0x591   : > { %v1172_v10 = vsub.f32 %v1169_v9, %v1171_v8 }
 0x593   : > { %v1173_v11 = vadd.f32 1e-05, %v1172_v10 }
 0x595   : > { %2067 = vrsqrt.f32 %v1173_v11 }
 0x5a2   : > { %v2068_v13 = vpop.eup %2067 }
 0x5a3   : > { %v1175_v15 = vmul.f32 %v2068_v13, %v1170_v12 }
 0x5a5   : > { %v1183_v17 = vmul.f32 %v1776_v14, %v1175_v15 }
 0x5a7   : > { %v1191_v18 = vadd.f32 %v1777_v16, %v1183_v17 }
 0x5a9   : > { %v1192_v19 = vpack.c.bf16 %v1191_v18, %v1191_v18 }
 0x5ab   : > { %1888 = vmatmul.mubr.msk.bf16.vlgmr.msra.gmra.mxu0 %vm826_vm2, %v1192_v19 }
 0x66b   : > { %v1253_v23 = vpop.f32.mrf.mxu0 }
 0x66c   : > { %v1254_v24 = vadd.f32 %v1778_v22, %v1253_v23 }
 0x66d   : > { %v1889_v25 = vpop.f32.mrf.mxu0 }
 0x66e   : > { %v1259_v26 = vmax.f32 %v1254_v24, 0.0 }
 0x66f   : > { %v1256_v27 = vpop.f32.mrf.mxu0 }
 0x670   : > { %v1260_v28 = vpack.c.bf16 %v1259_v26, %v1259_v26 }
 0x671   : > { %v1890_v29 = vpop.f32.mrf.mxu0 }
 0x672   : > { %1908 = vmatmul.mubr.bf16.vlgmr.msra.gmra.mxu1 %v1260_v28 }
 0x732   : > { %v1366_v31 = vpop.f32.mrf.mxu1 }
 0x733   : > { %v1367_v32 = vadd.f32 %v1782_v30, %v1366_v31 }
 0x734   : > { %v1909_v33 = vpop.f32.mrf.mxu1 }
 0x735   : > { %v1372_v34 = vadd.f32 %v1367_v32, %v1191_v18 }
 0x736   : > { %v1369_v35 = vpop.f32.mrf.mxu1 }
 0x737   : > { %v1373_v2 = vsel %vm826_vm2, %v1372_v34, 0.0  ;;  %v1377_v36 = vmul.f32 %v1372_v34, %v1372_v34 }
 0x738   : > { %1374 = vadd.xlane.f32.xlu0 %v1373_v2  ;;  %v1910_v37 = vpop.f32.mrf.mxu1 }
 0x739   : > { %v1378_v38 = vsel %vm826_vm2, %v1377_v36, 0.0 }
 0x73a   : > { %1379 = vadd.xlane.f32.xlu1 %v1378_v38 }
 0x7c1   : > { %v1375_v39 = vpop.xlane.xlu0 %1374 }
 0x7c2   : > { %v1376_v40 = vmul.f32 0.03125, %v1375_v39 }
 0x7c3   : > { %v1380_v41 = vpop.xlane.xlu1 %1379 }
 0x7c4   : > { %v1383_v42 = vmul.f32 %v1376_v40, %v1376_v40  ;;  %v1381_v43 = vmul.f32 0.03125, %v1380_v41  ;;  %v1382_v46 = vsub.f32 %v1372_v34, %v1376_v40 }
 0x7c6   : > { %v1384_v44 = vsub.f32 %v1381_v43, %v1383_v42 }
 0x7c8   : > { %v1385_v45 = vadd.f32 1e-05, %v1384_v44 }
 0x7ca   : > { %2069 = vrsqrt.f32 %v1385_v45 }
 0x7d7   : > { %v2070_v47 = vpop.eup %2069 }
 0x7d8   : > { %v1387_v49 = vmul.f32 %v2070_v47, %v1382_v46 }
 0x7da   : > { %v1395_v51 = vmul.f32 %v1791_v48, %v1387_v49  ;;  %1408 = sbr.rel (%p1793_p1) target bundleno = 2223 (0x8af), region = 108 }
 0x7dc   : > { %v1403_v52 = vadd.f32 %v1792_v50, %v1395_v51 }
 0x7de   : > { %1404 = vst.msk [vmem:[#allocation2] sm:$0xff] %vm826_vm2, %v1403_v52 }
 0x7df   : > { %v2071_v53 = vld [vmem:[%s2994_s15 + $0x8] sm:$0xff]   ;;  %v2350_v54 = vmov 0.0   ;;  %v2072_v55 = vld [vmem:[%s2994_s15] sm:$0xff]   ;;  %vm2351_vm8 = vmmov 0   ;;  %v1409_v56 = vpack.c.bf16 %v1403_v52, %v1403_v52 }
 0x7e0   : > { %1911 = vmatprep.subr.bf16.mxu0 %v2350_v54  ;;  %1915 = vmatprep.mubr.msk.bf16.mxu0 %vm2351_vm8, %v2350_v54  ;;  %v1794_v57 = vld [vmem:[%s2995_s6] ss:$0 sm:$0xff] }
 0x7e1   : > { %1912 = vmatpush3.bf16.msra.mxu0 %v2071_v53 }
 0x7e2   : > { %1913 = vmatprep.subr.bf16.mxu0 %v2350_v54 }
 0x7e5   : > { %1914 = vmatpush3.bf16.msra.mxu0 %v2072_v55 }
 0x7e8   : > { %1916 = vmatmul.mubr.msk.bf16.vlgmr.msra.gmra.mxu0 %vm826_vm2, %v1409_v56 }
 0x8a8   : > { %v1470_v58 = vpop.f32.mrf.mxu0 }
 0x8a9   : > { %v1471_v59 = vadd.f32 %v1794_v57, %v1470_v58 }
 0x8aa   : > { %v1917_v60 = vpop.f32.mrf.mxu0 }
 0x8ab   : > { %1476 = vst [vmem:[%s2737_s19] sm:$0xff] %v1471_v59 }
 0x8ac   : > { %v1473_v61 = vpop.f32.mrf.mxu0 }
 0x8ae   : > { %v1918_v62 = vpop.f32.mrf.mxu0 }
 0x8af PF: > { %s2996_s7 = sld [smem:[#allocation22_spill]]  ;;  %s1491_s30 = sshll.u32 %s2737_s19, 4  ;;  %s1492_s30 = int_to_ptr.vmem [resolvable:$true] %s1491_s30 }
 0x8b0   : > { %s2998_s29 = sld [smem:[#allocation46_spill]]  ;;  %s1478_s0 = scalar_lea.sflag [#allocation5], %s2671_s16 }
 0x8b1   : > { %s2213_s8 = scalar_lea.vmem %s1492_s30, 128  ;;  %s2352_s12 = smov [#allocation12]  }
 0x8b2   : > { %p2214_p9 = scmp.ne.s32.totalorder %s1492_s30, %s2213_s8  ;;  %s2217_s3 = sshll.u32 %s2352_s12, 4  ;;  %s2218_s3 = int_to_ptr.vmem [resolvable:$false] %s2217_s3 }
 0x8b3   : > { %s2219_s27 = scalar_lea.vmem %s2218_s3, 256  ;;  %p2220_p12 = scmp.lt.s32.totalorder %s1492_s30, %s2218_s3 }
 0x8b4   : > { %p2215_p4 = pnand %p2214_p9, %p2605_p5  ;;  %p2221_p8 = scmp.lt.s32.totalorder %s2219_s27, %s2213_s8 }
 0x8b5   : > { %s1799_s23 = sshll.u32 %s2996_s7, 7 }
 0x8b6   : > { %s1489_s1 = scalar_lea.hbm %s2998_s29, %s1799_s23  ;;  %p2216_p3 = pneg %p2215_p4 }
 0x8b7   : > { %p2222_p0 = por %p2221_p8, %p2220_p12 }
 0x8b9   : > { %p2223_p2 = pnand %p2222_p0, %p2216_p3 }
 0x8bb   : > { %2226 = shalt.err (!%p2223_p2)
}
 0x8bc   : > { %s2227_s4 = scalar_lea.hbm %s1489_s1, 128  ;;  %s2231_s9 = scalar_lea.hbm %s2998_s29, 256 }
 0x8bd   : > { %p2228_p10 = scmp.ne.s32.totalorder %s1489_s1, %s2227_s4  ;;  %p2232_p7 = scmp.lt.s32.totalorder %s1489_s1, %s2998_s29 }
 0x8be   : > { %p2233_p11 = scmp.lt.s32.totalorder %s2231_s9, %s2227_s4 }
 0x8bf   : > { %p2229_p13 = pnand %p2228_p10, %p2605_p5 }
 0x8c0   : > { %p2234_p1 = por %p2233_p11, %p2232_p7 }
 0x8c1   : > { %p2230_p6 = pneg %p2229_p13 }
 0x8c3   : > { %p2235_p9 = pnand %p2234_p1, %p2230_p6 }
 0x8c5   : > { %2238 = shalt.err (!%p2235_p9)
}
 0x8c6   : > { %1929 = dma.vmem_to_hbm [thread:$0]  (%p2605_p5), %s1492_s30, 128, %s1489_s1, %s1478_s0  }
 0x8c7 PF: > { %s2999_s24 = sld [smem:[#allocation30_spill]]  ;;  %p1952_p4 = scmp.ge.s32.totalorder %s2341_s28, 2 }
 0x8c8   : > { %s1503_s17 = sand.u32 1, %s2313_s21  }
 0x8c9   : > { %s1504_s13 = scalar_lea.sflag [#allocation5], %s1503_s17 }
 0x8cd   : > { %p3000_p3 = scmp.ne.s32.totalorder %s2999_s24, 0 }
 0x8cf   : > { %p1948_p12 = pnand %p1952_p4, %p3000_p3 }
 0x8d1   : > { %p1949_p8 = pneg %p1948_p12 }
 0x8d3   : > { %2296 = dma.done.wait (%p1949_p8), %s1504_s13, 128  }
 0x8d4   : > { %2298 = vsyncadd (%p1949_p8), %s1504_s13, 4294967168  ;;  %s37_s28 = sadd.s32 1, %s2341_s28   ;;  %s3001_s18 = sld [smem:[#allocation17_spill]] }
 0x8d5   : > { %p34_p0 = scmp.ge.s32.totalorder %s37_s28, 6   ;;  %s3002_s19 = sld [smem:[#allocation18_spill]] }
 0x8d6   : > { %s3003_s20 = sld [smem:[#allocation26_spill]] }
 0x8d7   : > { %s3004_s21 = sld [smem:[#allocation19_spill]] }
 0x8d8   : > { %s3005_s22 = sld [smem:[#allocation20_spill]] }
 0x8d9   : > { %s3006_s23 = sld [smem:[#allocation29_spill]]  ;;  %36 = sbr.rel (!%p34_p0) target bundleno = 30 (0x1e), region = 205 }
 0x8da   : > { %s3007_s24 = sld [smem:[#allocation23_spill]] }
 0x8db   : > { %s3008_s25 = sld [smem:[#allocation24_spill]] }
 0x8dc   : > { %s3009_s26 = sld [smem:[#allocation25_spill]] }
 0x8dd   : > { %s3010_s27 = sld [smem:[#allocation27_spill]] }
 0x8de   :  { %1509 = vsyncpa [#allocation4], 1 }
 0x8df   :  { %1511 = vsyncpa [#allocation4 + $0x1], 1 }
 0x8e0   :  { %1512 = vsyncpa [#allocation7], 1 }
 0x8e1   :  { %1514 = vsyncpa [#allocation7 + $0x1], 1 }
 0x8e2   :  { %1515 = vsyncpa [#allocation10], 1 }
 0x8e3   :  { %1517 = vsyncpa [#allocation10 + $0x1], 1 }
 0x8e4   :  { %1518 = vsyncpa [#allocation5], 1 }
 0x8e5   :  { %1520 = vsyncpa [#allocation5 + $0x1], 1 }

</bundles_post_ra>
